<compile_context>
chip_gen: v7x
topology: tpu7x:2x2x1
jax: 0.10.0
libtpu: 0.0.40
codegen_flags: <defaults>
</compile_context>

<pallas_src>
import functools

import jax
import jax.numpy as jnp
from jax import lax
from jax.experimental import pallas as pl
from jax.experimental.pallas import tpu as pltpu

_UNROLL_T_MAX = 16  # static unroll threshold for the serial recurrence


def _lstm_cell(gates, c, H):
    """One LSTM cell update from pre-activation gates (PyTorch order i,f,g,o)."""
    i_g = jax.nn.sigmoid(gates[:, 0 * H:1 * H])
    f_g = jax.nn.sigmoid(gates[:, 1 * H:2 * H])
    g_g = jnp.tanh(gates[:, 2 * H:3 * H])
    o_g = jax.nn.sigmoid(gates[:, 3 * H:4 * H])
    c_new = f_g * c + i_g * g_g
    h_new = o_g * jnp.tanh(c_new)
    return h_new, c_new


def _lstm_kernel_unrolled(x_ref, wih_ref, whh_ref, b_ref, h_out_ref, c_out_ref,
                          *, T, B, H):
    # x_ref:   (T*B, I)  time-flattened inputs (flatten done in wrapper, layout-only)
    # wih_ref: (I, 4H)   W_ih^T     whh_ref: (H, 4H)  W_hh^T
    # b_ref:   (1, 4H)   b_ih + b_hh (folded once)
    # h_out_ref/c_out_ref: (1, B, H)

    # Hoisted input projection: one big MXU push for every timestep.
    gx = jnp.dot(x_ref[...], wih_ref[...],
                 preferred_element_type=jnp.float32) + b_ref[...]
    whh = whh_ref[...]  # load recurrent weights once

    h = jnp.zeros((B, H), jnp.float32)
    c = jnp.zeros((B, H), jnp.float32)

    # Serial recurrence: only h @ W_hh^T + elementwise per step.  T is small and
    # static -> full unroll keeps h/c in vregs and gives the scheduler full
    # visibility.
    for t in range(T):
        gates = gx[t * B:(t + 1) * B, :] + jnp.dot(
            h, whh, preferred_element_type=jnp.float32)
        h, c = _lstm_cell(gates, c, H)

    h_out_ref[...] = h.astype(h_out_ref.dtype)[None]
    c_out_ref[...] = c.astype(c_out_ref.dtype)[None]


def _lstm_kernel_looped(x_ref, wih_ref, whh_ref, b_ref, h_out_ref, c_out_ref,
                        gx_ref, *, T, B, H):
    # Same as above, but the precomputed gates live in a (T, B, 4H) VMEM scratch
    # and the recurrence is a lax.fori_loop (bounded code size for long T).
    gx = jnp.dot(x_ref[...], wih_ref[...],
                 preferred_element_type=jnp.float32) + b_ref[...]
    gx_ref[...] = gx.reshape(T, B, 4 * H)
    whh = whh_ref[...]

    def body(t, carry):
        h, c = carry
        gates = gx_ref[t] + jnp.dot(h, whh, preferred_element_type=jnp.float32)
        return _lstm_cell(gates, c, H)

    h0 = jnp.zeros((B, H), jnp.float32)
    c0 = jnp.zeros((B, H), jnp.float32)
    h, c = lax.fori_loop(0, T, body, (h0, c0))

    h_out_ref[...] = h.astype(h_out_ref.dtype)[None]
    c_out_ref[...] = c.astype(c_out_ref.dtype)[None]


def encoder_lstm_forward(x, w_ih, w_hh, b_ih, b_hh):
    """Single-layer LSTM encoder.  x: (T, B, I).  Returns (h_n, c_n)."""
    T, B, I = x.shape
    H4 = w_ih.shape[0]
    H = H4 // 4

    # Constant-weight preprocessing (done once, outside the kernel):
    wih_t = jnp.transpose(w_ih)               # (I, 4H)
    whh_t = jnp.transpose(w_hh)               # (H, 4H)
    bias = (b_ih + b_hh).reshape(1, H4)       # fold the two biases once
    x2d = x.reshape(T * B, I)                 # flatten time into rows (layout-only)

    flops = 2 * T * B * H4 * (I + H) + 10 * T * B * H
    transcendentals = 5 * T * B * H           # 3 sigmoid + 2 tanh per (b, h)
    bytes_accessed = 4 * (x2d.size + wih_t.size + whh_t.size
                          + bias.size + 2 * B * H)

    unroll = T <= _UNROLL_T_MAX
    if unroll:
        kernel = functools.partial(_lstm_kernel_unrolled, T=T, B=B, H=H)
        scratch_shapes = ()
    else:
        kernel = functools.partial(_lstm_kernel_looped, T=T, B=B, H=H)
        scratch_shapes = (pltpu.VMEM((T, B, H4), jnp.float32),)

    vmem = pl.BlockSpec(memory_space=pltpu.MemorySpace.VMEM)
    h_n, c_n = pl.pallas_call(
        kernel,
        out_shape=(jax.ShapeDtypeStruct((1, B, H), x.dtype),
                   jax.ShapeDtypeStruct((1, B, H), x.dtype)),
        in_specs=[vmem, vmem, vmem, vmem],
        out_specs=(vmem, vmem),
        scratch_shapes=scratch_shapes,
        cost_estimate=pl.CostEstimate(flops=flops,
                                      transcendentals=transcendentals,
                                      bytes_accessed=bytes_accessed),
    )(x2d, wih_t, whh_t, bias)
    return h_n, c_n


def _ref_lstm(x, w_ih, w_hh, b_ih, b_hh):
    """Pure-JAX reference matching torch.nn.LSTM single-layer semantics."""
    T, B, I = x.shape
    H = w_hh.shape[1]

    def step(carry, x_t):
        h, c = carry
        gates = x_t @ w_ih.T + b_ih + h @ w_hh.T + b_hh
        i, f, g, o = jnp.split(gates, 4, axis=-1)
        i = jax.nn.sigmoid(i)
        f = jax.nn.sigmoid(f)
        g = jnp.tanh(g)
        o = jax.nn.sigmoid(o)
        c = f * c + i * g
        h = o * jnp.tanh(c)
        return (h, c), h

    init = (jnp.zeros((B, H), x.dtype), jnp.zeros((B, H), x.dtype))
    (h, c), _ = jax.lax.scan(step, init, x)
    return h[None], c[None]


if __name__ == "__main__":
    # Small shapes consistent with the module's forward:
    #   input_seq: (seq_len=8, batch=4, input_size=16), hidden_size=32
    T, B, I, H = 8, 4, 16, 32
    key = jax.random.PRNGKey(0)
    k_x, k_wih, k_whh, k_bih, k_bhh = jax.random.split(key, 5)

    # PyTorch-style uniform(-1/sqrt(H), 1/sqrt(H)) init
    bound = 1.0 / jnp.sqrt(jnp.float32(H))
    w_ih = jax.random.uniform(k_wih, (4 * H, I), jnp.float32, -bound, bound)
    w_hh = jax.random.uniform(k_whh, (4 * H, H), jnp.float32, -bound, bound)
    b_ih = jax.random.uniform(k_bih, (4 * H,), jnp.float32, -bound, bound)
    b_hh = jax.random.uniform(k_bhh, (4 * H,), jnp.float32, -bound, bound)

    x = jax.random.normal(k_x, (T, B, I), jnp.float32)

    h_n, c_n = encoder_lstm_forward(x, w_ih, w_hh, b_ih, b_hh)
    jax.block_until_ready((h_n, c_n))

    h_ref, c_ref = _ref_lstm(x, w_ih, w_hh, b_ih, b_hh)
    assert h_n.shape == (1, B, H) and c_n.shape == (1, B, H)
    assert jnp.allclose(h_n, h_ref, atol=1e-5, rtol=1e-5)
    assert jnp.allclose(c_n, c_ref, atol=1e-5, rtol=1e-5)

    # Exercise the long-sequence (fori_loop + VMEM scratch) path as well.
    T2 = 24
    x2 = jax.random.normal(jax.random.PRNGKey(1), (T2, B, I), jnp.float32)
    h_n2, c_n2 = encoder_lstm_forward(x2, w_ih, w_hh, b_ih, b_hh)
    jax.block_until_ready((h_n2, c_n2))
    h_ref2, c_ref2 = _ref_lstm(x2, w_ih, w_hh, b_ih, b_hh)
    assert jnp.allclose(h_n2, h_ref2, atol=1e-5, rtol=1e-5)
    assert jnp.allclose(c_n2, c_ref2, atol=1e-5, rtol=1e-5)

    print("KERNEL_OK")
</pallas_src>

<mosaic_0001>
module attributes {stable_mosaic.version = 11 : i64} {
  func.func @_lstm_kernel_unrolled(%arg0: memref<32x16xf32, #tpu.memory_space<vmem>>, %arg1: memref<16x128xf32, #tpu.memory_space<vmem>>, %arg2: memref<32x128xf32, #tpu.memory_space<vmem>>, %arg3: memref<1x128xf32, #tpu.memory_space<vmem>>, %arg4: memref<1x4x32xf32, #tpu.memory_space<vmem>>, %arg5: memref<1x4x32xf32, #tpu.memory_space<vmem>>) attributes {dimension_semantics = [], scalar_prefetch = 0 : i64, scratch_operands = 0 : i64, tpu.core_type = #tpu.core_type<tc>} {
    %c0 = arith.constant 0 : index
    %c0_0 = arith.constant 0 : index
    %0 = vector.load %arg0[%c0, %c0_0] : memref<32x16xf32, #tpu.memory_space<vmem>>, vector<32x16xf32>
    %c0_1 = arith.constant 0 : index
    %c0_2 = arith.constant 0 : index
    %1 = vector.load %arg1[%c0_1, %c0_2] : memref<16x128xf32, #tpu.memory_space<vmem>>, vector<16x128xf32>
    %cst = arith.constant dense<0.000000e+00> : vector<32x128xf32>
    %2 = tpu.matmul %0, %1, %cst {dimension_numbers = #tpu.dot_dimension_numbers<[1], [0], [0], [1], [0, 0, 1, 1], [], []>} : vector<32x16xf32>, vector<16x128xf32>, vector<32x128xf32> -> vector<32x128xf32>
    %c0_3 = arith.constant 0 : index
    %c0_4 = arith.constant 0 : index
    %3 = vector.load %arg3[%c0_3, %c0_4] : memref<1x128xf32, #tpu.memory_space<vmem>>, vector<1x128xf32>
    %4 = vector.broadcast %3 : vector<1x128xf32> to vector<32x128xf32>
    %5 = arith.addf %2, %4 : vector<32x128xf32>
    %c0_5 = arith.constant 0 : index
    %c0_6 = arith.constant 0 : index
    %6 = vector.load %arg2[%c0_5, %c0_6] : memref<32x128xf32, #tpu.memory_space<vmem>>, vector<32x128xf32>
    %cst_7 = arith.constant 0.000000e+00 : f32
    %7 = vector.broadcast %cst_7 : f32 to vector<4x32xf32>
    %cst_8 = arith.constant 0.000000e+00 : f32
    %8 = vector.broadcast %cst_8 : f32 to vector<4x32xf32>
    %9 = vector.extract_strided_slice %5 {offsets = [0, 0], sizes = [4, 128], strides = [1, 1]} : vector<32x128xf32> to vector<4x128xf32>
    %cst_9 = arith.constant dense<0.000000e+00> : vector<4x128xf32>
    %10 = tpu.matmul %7, %6, %cst_9 {dimension_numbers = #tpu.dot_dimension_numbers<[1], [0], [0], [1], [0, 0, 1, 1], [], []>} : vector<4x32xf32>, vector<32x128xf32>, vector<4x128xf32> -> vector<4x128xf32>
    %11 = arith.addf %9, %10 : vector<4x128xf32>
    %12 = vector.extract_strided_slice %11 {offsets = [0, 0], sizes = [4, 32], strides = [1, 1]} : vector<4x128xf32> to vector<4x32xf32>
    %13 = arith.negf %12 : vector<4x32xf32>
    %14 = math.exp %13 : vector<4x32xf32>
    %cst_10 = arith.constant 1.000000e+00 : f32
    %15 = vector.broadcast %cst_10 : f32 to vector<4x32xf32>
    %16 = arith.addf %15, %14 : vector<4x32xf32>
    %17 = arith.divf %15, %16 : vector<4x32xf32>
    %18 = vector.extract_strided_slice %11 {offsets = [0, 32], sizes = [4, 32], strides = [1, 1]} : vector<4x128xf32> to vector<4x32xf32>
    %19 = arith.negf %18 : vector<4x32xf32>
    %20 = math.exp %19 : vector<4x32xf32>
    %cst_11 = arith.constant 1.000000e+00 : f32
    %21 = vector.broadcast %cst_11 : f32 to vector<4x32xf32>
    %22 = arith.addf %21, %20 : vector<4x32xf32>
    %23 = arith.divf %21, %22 : vector<4x32xf32>
    %24 = vector.extract_strided_slice %11 {offsets = [0, 64], sizes = [4, 32], strides = [1, 1]} : vector<4x128xf32> to vector<4x32xf32>
    %25 = math.tanh %24 : vector<4x32xf32>
    %26 = vector.extract_strided_slice %11 {offsets = [0, 96], sizes = [4, 32], strides = [1, 1]} : vector<4x128xf32> to vector<4x32xf32>
    %27 = arith.negf %26 : vector<4x32xf32>
    %28 = math.exp %27 : vector<4x32xf32>
    %cst_12 = arith.constant 1.000000e+00 : f32
    %29 = vector.broadcast %cst_12 : f32 to vector<4x32xf32>
    %30 = arith.addf %29, %28 : vector<4x32xf32>
    %31 = arith.divf %29, %30 : vector<4x32xf32>
    %32 = arith.mulf %23, %8 : vector<4x32xf32>
    %33 = arith.mulf %17, %25 : vector<4x32xf32>
    %34 = arith.addf %32, %33 : vector<4x32xf32>
    %35 = math.tanh %34 : vector<4x32xf32>
    %36 = arith.mulf %31, %35 : vector<4x32xf32>
    %37 = vector.extract_strided_slice %5 {offsets = [4, 0], sizes = [4, 128], strides = [1, 1]} : vector<32x128xf32> to vector<4x128xf32>
    %cst_13 = arith.constant dense<0.000000e+00> : vector<4x128xf32>
    %38 = tpu.matmul %36, %6, %cst_13 {dimension_numbers = #tpu.dot_dimension_numbers<[1], [0], [0], [1], [0, 0, 1, 1], [], []>} : vector<4x32xf32>, vector<32x128xf32>, vector<4x128xf32> -> vector<4x128xf32>
    %39 = arith.addf %37, %38 : vector<4x128xf32>
    %40 = vector.extract_strided_slice %39 {offsets = [0, 0], sizes = [4, 32], strides = [1, 1]} : vector<4x128xf32> to vector<4x32xf32>
    %41 = arith.negf %40 : vector<4x32xf32>
    %42 = math.exp %41 : vector<4x32xf32>
    %cst_14 = arith.constant 1.000000e+00 : f32
    %43 = vector.broadcast %cst_14 : f32 to vector<4x32xf32>
    %44 = arith.addf %43, %42 : vector<4x32xf32>
    %45 = arith.divf %43, %44 : vector<4x32xf32>
    %46 = vector.extract_strided_slice %39 {offsets = [0, 32], sizes = [4, 32], strides = [1, 1]} : vector<4x128xf32> to vector<4x32xf32>
    %47 = arith.negf %46 : vector<4x32xf32>
    %48 = math.exp %47 : vector<4x32xf32>
    %cst_15 = arith.constant 1.000000e+00 : f32
    %49 = vector.broadcast %cst_15 : f32 to vector<4x32xf32>
    %50 = arith.addf %49, %48 : vector<4x32xf32>
    %51 = arith.divf %49, %50 : vector<4x32xf32>
    %52 = vector.extract_strided_slice %39 {offsets = [0, 64], sizes = [4, 32], strides = [1, 1]} : vector<4x128xf32> to vector<4x32xf32>
    %53 = math.tanh %52 : vector<4x32xf32>
    %54 = vector.extract_strided_slice %39 {offsets = [0, 96], sizes = [4, 32], strides = [1, 1]} : vector<4x128xf32> to vector<4x32xf32>
    %55 = arith.negf %54 : vector<4x32xf32>
    %56 = math.exp %55 : vector<4x32xf32>
    %cst_16 = arith.constant 1.000000e+00 : f32
    %57 = vector.broadcast %cst_16 : f32 to vector<4x32xf32>
    %58 = arith.addf %57, %56 : vector<4x32xf32>
    %59 = arith.divf %57, %58 : vector<4x32xf32>
    %60 = arith.mulf %51, %34 : vector<4x32xf32>
    %61 = arith.mulf %45, %53 : vector<4x32xf32>
    %62 = arith.addf %60, %61 : vector<4x32xf32>
    %63 = math.tanh %62 : vector<4x32xf32>
    %64 = arith.mulf %59, %63 : vector<4x32xf32>
    %65 = vector.extract_strided_slice %5 {offsets = [8, 0], sizes = [4, 128], strides = [1, 1]} : vector<32x128xf32> to vector<4x128xf32>
    %cst_17 = arith.constant dense<0.000000e+00> : vector<4x128xf32>
    %66 = tpu.matmul %64, %6, %cst_17 {dimension_numbers = #tpu.dot_dimension_numbers<[1], [0], [0], [1], [0, 0, 1, 1], [], []>} : vector<4x32xf32>, vector<32x128xf32>, vector<4x128xf32> -> vector<4x128xf32>
    %67 = arith.addf %65, %66 : vector<4x128xf32>
    %68 = vector.extract_strided_slice %67 {offsets = [0, 0], sizes = [4, 32], strides = [1, 1]} : vector<4x128xf32> to vector<4x32xf32>
    %69 = arith.negf %68 : vector<4x32xf32>
    %70 = math.exp %69 : vector<4x32xf32>
    %cst_18 = arith.constant 1.000000e+00 : f32
    %71 = vector.broadcast %cst_18 : f32 to vector<4x32xf32>
    %72 = arith.addf %71, %70 : vector<4x32xf32>
    %73 = arith.divf %71, %72 : vector<4x32xf32>
    %74 = vector.extract_strided_slice %67 {offsets = [0, 32], sizes = [4, 32], strides = [1, 1]} : vector<4x128xf32> to vector<4x32xf32>
    %75 = arith.negf %74 : vector<4x32xf32>
    %76 = math.exp %75 : vector<4x32xf32>
    %cst_19 = arith.constant 1.000000e+00 : f32
    %77 = vector.broadcast %cst_19 : f32 to vector<4x32xf32>
    %78 = arith.addf %77, %76 : vector<4x32xf32>
    %79 = arith.divf %77, %78 : vector<4x32xf32>
    %80 = vector.extract_strided_slice %67 {offsets = [0, 64], sizes = [4, 32], strides = [1, 1]} : vector<4x128xf32> to vector<4x32xf32>
    %81 = math.tanh %80 : vector<4x32xf32>
    %82 = vector.extract_strided_slice %67 {offsets = [0, 96], sizes = [4, 32], strides = [1, 1]} : vector<4x128xf32> to vector<4x32xf32>
    %83 = arith.negf %82 : vector<4x32xf32>
    %84 = math.exp %83 : vector<4x32xf32>
    %cst_20 = arith.constant 1.000000e+00 : f32
    %85 = vector.broadcast %cst_20 : f32 to vector<4x32xf32>
    %86 = arith.addf %85, %84 : vector<4x32xf32>
    %87 = arith.divf %85, %86 : vector<4x32xf32>
    %88 = arith.mulf %79, %62 : vector<4x32xf32>
    %89 = arith.mulf %73, %81 : vector<4x32xf32>
    %90 = arith.addf %88, %89 : vector<4x32xf32>
    %91 = math.tanh %90 : vector<4x32xf32>
    %92 = arith.mulf %87, %91 : vector<4x32xf32>
    %93 = vector.extract_strided_slice %5 {offsets = [12, 0], sizes = [4, 128], strides = [1, 1]} : vector<32x128xf32> to vector<4x128xf32>
    %cst_21 = arith.constant dense<0.000000e+00> : vector<4x128xf32>
    %94 = tpu.matmul %92, %6, %cst_21 {dimension_numbers = #tpu.dot_dimension_numbers<[1], [0], [0], [1], [0, 0, 1, 1], [], []>} : vector<4x32xf32>, vector<32x128xf32>, vector<4x128xf32> -> vector<4x128xf32>
    %95 = arith.addf %93, %94 : vector<4x128xf32>
    %96 = vector.extract_strided_slice %95 {offsets = [0, 0], sizes = [4, 32], strides = [1, 1]} : vector<4x128xf32> to vector<4x32xf32>
    %97 = arith.negf %96 : vector<4x32xf32>
    %98 = math.exp %97 : vector<4x32xf32>
    %cst_22 = arith.constant 1.000000e+00 : f32
    %99 = vector.broadcast %cst_22 : f32 to vector<4x32xf32>
    %100 = arith.addf %99, %98 : vector<4x32xf32>
    %101 = arith.divf %99, %100 : vector<4x32xf32>
    %102 = vector.extract_strided_slice %95 {offsets = [0, 32], sizes = [4, 32], strides = [1, 1]} : vector<4x128xf32> to vector<4x32xf32>
    %103 = arith.negf %102 : vector<4x32xf32>
    %104 = math.exp %103 : vector<4x32xf32>
    %cst_23 = arith.constant 1.000000e+00 : f32
    %105 = vector.broadcast %cst_23 : f32 to vector<4x32xf32>
    %106 = arith.addf %105, %104 : vector<4x32xf32>
    %107 = arith.divf %105, %106 : vector<4x32xf32>
    %108 = vector.extract_strided_slice %95 {offsets = [0, 64], sizes = [4, 32], strides = [1, 1]} : vector<4x128xf32> to vector<4x32xf32>
    %109 = math.tanh %108 : vector<4x32xf32>
    %110 = vector.extract_strided_slice %95 {offsets = [0, 96], sizes = [4, 32], strides = [1, 1]} : vector<4x128xf32> to vector<4x32xf32>
    %111 = arith.negf %110 : vector<4x32xf32>
    %112 = math.exp %111 : vector<4x32xf32>
    %cst_24 = arith.constant 1.000000e+00 : f32
    %113 = vector.broadcast %cst_24 : f32 to vector<4x32xf32>
    %114 = arith.addf %113, %112 : vector<4x32xf32>
    %115 = arith.divf %113, %114 : vector<4x32xf32>
    %116 = arith.mulf %107, %90 : vector<4x32xf32>
    %117 = arith.mulf %101, %109 : vector<4x32xf32>
    %118 = arith.addf %116, %117 : vector<4x32xf32>
    %119 = math.tanh %118 : vector<4x32xf32>
    %120 = arith.mulf %115, %119 : vector<4x32xf32>
    %121 = vector.extract_strided_slice %5 {offsets = [16, 0], sizes = [4, 128], strides = [1, 1]} : vector<32x128xf32> to vector<4x128xf32>
    %cst_25 = arith.constant dense<0.000000e+00> : vector<4x128xf32>
    %122 = tpu.matmul %120, %6, %cst_25 {dimension_numbers = #tpu.dot_dimension_numbers<[1], [0], [0], [1], [0, 0, 1, 1], [], []>} : vector<4x32xf32>, vector<32x128xf32>, vector<4x128xf32> -> vector<4x128xf32>
    %123 = arith.addf %121, %122 : vector<4x128xf32>
    %124 = vector.extract_strided_slice %123 {offsets = [0, 0], sizes = [4, 32], strides = [1, 1]} : vector<4x128xf32> to vector<4x32xf32>
    %125 = arith.negf %124 : vector<4x32xf32>
    %126 = math.exp %125 : vector<4x32xf32>
    %cst_26 = arith.constant 1.000000e+00 : f32
    %127 = vector.broadcast %cst_26 : f32 to vector<4x32xf32>
    %128 = arith.addf %127, %126 : vector<4x32xf32>
    %129 = arith.divf %127, %128 : vector<4x32xf32>
    %130 = vector.extract_strided_slice %123 {offsets = [0, 32], sizes = [4, 32], strides = [1, 1]} : vector<4x128xf32> to vector<4x32xf32>
    %131 = arith.negf %130 : vector<4x32xf32>
    %132 = math.exp %131 : vector<4x32xf32>
    %cst_27 = arith.constant 1.000000e+00 : f32
    %133 = vector.broadcast %cst_27 : f32 to vector<4x32xf32>
    %134 = arith.addf %133, %132 : vector<4x32xf32>
    %135 = arith.divf %133, %134 : vector<4x32xf32>
    %136 = vector.extract_strided_slice %123 {offsets = [0, 64], sizes = [4, 32], strides = [1, 1]} : vector<4x128xf32> to vector<4x32xf32>
    %137 = math.tanh %136 : vector<4x32xf32>
    %138 = vector.extract_strided_slice %123 {offsets = [0, 96], sizes = [4, 32], strides = [1, 1]} : vector<4x128xf32> to vector<4x32xf32>
    %139 = arith.negf %138 : vector<4x32xf32>
    %140 = math.exp %139 : vector<4x32xf32>
    %cst_28 = arith.constant 1.000000e+00 : f32
    %141 = vector.broadcast %cst_28 : f32 to vector<4x32xf32>
    %142 = arith.addf %141, %140 : vector<4x32xf32>
    %143 = arith.divf %141, %142 : vector<4x32xf32>
    %144 = arith.mulf %135, %118 : vector<4x32xf32>
    %145 = arith.mulf %129, %137 : vector<4x32xf32>
    %146 = arith.addf %144, %145 : vector<4x32xf32>
    %147 = math.tanh %146 : vector<4x32xf32>
    %148 = arith.mulf %143, %147 : vector<4x32xf32>
    %149 = vector.extract_strided_slice %5 {offsets = [20, 0], sizes = [4, 128], strides = [1, 1]} : vector<32x128xf32> to vector<4x128xf32>
    %cst_29 = arith.constant dense<0.000000e+00> : vector<4x128xf32>
    %150 = tpu.matmul %148, %6, %cst_29 {dimension_numbers = #tpu.dot_dimension_numbers<[1], [0], [0], [1], [0, 0, 1, 1], [], []>} : vector<4x32xf32>, vector<32x128xf32>, vector<4x128xf32> -> vector<4x128xf32>
    %151 = arith.addf %149, %150 : vector<4x128xf32>
    %152 = vector.extract_strided_slice %151 {offsets = [0, 0], sizes = [4, 32], strides = [1, 1]} : vector<4x128xf32> to vector<4x32xf32>
    %153 = arith.negf %152 : vector<4x32xf32>
    %154 = math.exp %153 : vector<4x32xf32>
    %cst_30 = arith.constant 1.000000e+00 : f32
    %155 = vector.broadcast %cst_30 : f32 to vector<4x32xf32>
    %156 = arith.addf %155, %154 : vector<4x32xf32>
    %157 = arith.divf %155, %156 : vector<4x32xf32>
    %158 = vector.extract_strided_slice %151 {offsets = [0, 32], sizes = [4, 32], strides = [1, 1]} : vector<4x128xf32> to vector<4x32xf32>
    %159 = arith.negf %158 : vector<4x32xf32>
    %160 = math.exp %159 : vector<4x32xf32>
    %cst_31 = arith.constant 1.000000e+00 : f32
    %161 = vector.broadcast %cst_31 : f32 to vector<4x32xf32>
    %162 = arith.addf %161, %160 : vector<4x32xf32>
    %163 = arith.divf %161, %162 : vector<4x32xf32>
    %164 = vector.extract_strided_slice %151 {offsets = [0, 64], sizes = [4, 32], strides = [1, 1]} : vector<4x128xf32> to vector<4x32xf32>
    %165 = math.tanh %164 : vector<4x32xf32>
    %166 = vector.extract_strided_slice %151 {offsets = [0, 96], sizes = [4, 32], strides = [1, 1]} : vector<4x128xf32> to vector<4x32xf32>
    %167 = arith.negf %166 : vector<4x32xf32>
    %168 = math.exp %167 : vector<4x32xf32>
    %cst_32 = arith.constant 1.000000e+00 : f32
    %169 = vector.broadcast %cst_32 : f32 to vector<4x32xf32>
    %170 = arith.addf %169, %168 : vector<4x32xf32>
    %171 = arith.divf %169, %170 : vector<4x32xf32>
    %172 = arith.mulf %163, %146 : vector<4x32xf32>
    %173 = arith.mulf %157, %165 : vector<4x32xf32>
    %174 = arith.addf %172, %173 : vector<4x32xf32>
    %175 = math.tanh %174 : vector<4x32xf32>
    %176 = arith.mulf %171, %175 : vector<4x32xf32>
    %177 = vector.extract_strided_slice %5 {offsets = [24, 0], sizes = [4, 128], strides = [1, 1]} : vector<32x128xf32> to vector<4x128xf32>
    %cst_33 = arith.constant dense<0.000000e+00> : vector<4x128xf32>
    %178 = tpu.matmul %176, %6, %cst_33 {dimension_numbers = #tpu.dot_dimension_numbers<[1], [0], [0], [1], [0, 0, 1, 1], [], []>} : vector<4x32xf32>, vector<32x128xf32>, vector<4x128xf32> -> vector<4x128xf32>
    %179 = arith.addf %177, %178 : vector<4x128xf32>
    %180 = vector.extract_strided_slice %179 {offsets = [0, 0], sizes = [4, 32], strides = [1, 1]} : vector<4x128xf32> to vector<4x32xf32>
    %181 = arith.negf %180 : vector<4x32xf32>
    %182 = math.exp %181 : vector<4x32xf32>
    %cst_34 = arith.constant 1.000000e+00 : f32
    %183 = vector.broadcast %cst_34 : f32 to vector<4x32xf32>
    %184 = arith.addf %183, %182 : vector<4x32xf32>
    %185 = arith.divf %183, %184 : vector<4x32xf32>
    %186 = vector.extract_strided_slice %179 {offsets = [0, 32], sizes = [4, 32], strides = [1, 1]} : vector<4x128xf32> to vector<4x32xf32>
    %187 = arith.negf %186 : vector<4x32xf32>
    %188 = math.exp %187 : vector<4x32xf32>
    %cst_35 = arith.constant 1.000000e+00 : f32
    %189 = vector.broadcast %cst_35 : f32 to vector<4x32xf32>
    %190 = arith.addf %189, %188 : vector<4x32xf32>
    %191 = arith.divf %189, %190 : vector<4x32xf32>
    %192 = vector.extract_strided_slice %179 {offsets = [0, 64], sizes = [4, 32], strides = [1, 1]} : vector<4x128xf32> to vector<4x32xf32>
    %193 = math.tanh %192 : vector<4x32xf32>
    %194 = vector.extract_strided_slice %179 {offsets = [0, 96], sizes = [4, 32], strides = [1, 1]} : vector<4x128xf32> to vector<4x32xf32>
    %195 = arith.negf %194 : vector<4x32xf32>
    %196 = math.exp %195 : vector<4x32xf32>
    %cst_36 = arith.constant 1.000000e+00 : f32
    %197 = vector.broadcast %cst_36 : f32 to vector<4x32xf32>
    %198 = arith.addf %197, %196 : vector<4x32xf32>
    %199 = arith.divf %197, %198 : vector<4x32xf32>
    %200 = arith.mulf %191, %174 : vector<4x32xf32>
    %201 = arith.mulf %185, %193 : vector<4x32xf32>
    %202 = arith.addf %200, %201 : vector<4x32xf32>
    %203 = math.tanh %202 : vector<4x32xf32>
    %204 = arith.mulf %199, %203 : vector<4x32xf32>
    %205 = vector.extract_strided_slice %5 {offsets = [28, 0], sizes = [4, 128], strides = [1, 1]} : vector<32x128xf32> to vector<4x128xf32>
    %cst_37 = arith.constant dense<0.000000e+00> : vector<4x128xf32>
    %206 = tpu.matmul %204, %6, %cst_37 {dimension_numbers = #tpu.dot_dimension_numbers<[1], [0], [0], [1], [0, 0, 1, 1], [], []>} : vector<4x32xf32>, vector<32x128xf32>, vector<4x128xf32> -> vector<4x128xf32>
    %207 = arith.addf %205, %206 : vector<4x128xf32>
    %208 = vector.extract_strided_slice %207 {offsets = [0, 0], sizes = [4, 32], strides = [1, 1]} : vector<4x128xf32> to vector<4x32xf32>
    %209 = arith.negf %208 : vector<4x32xf32>
    %210 = math.exp %209 : vector<4x32xf32>
    %cst_38 = arith.constant 1.000000e+00 : f32
    %211 = vector.broadcast %cst_38 : f32 to vector<4x32xf32>
    %212 = arith.addf %211, %210 : vector<4x32xf32>
    %213 = arith.divf %211, %212 : vector<4x32xf32>
    %214 = vector.extract_strided_slice %207 {offsets = [0, 32], sizes = [4, 32], strides = [1, 1]} : vector<4x128xf32> to vector<4x32xf32>
    %215 = arith.negf %214 : vector<4x32xf32>
    %216 = math.exp %215 : vector<4x32xf32>
    %cst_39 = arith.constant 1.000000e+00 : f32
    %217 = vector.broadcast %cst_39 : f32 to vector<4x32xf32>
    %218 = arith.addf %217, %216 : vector<4x32xf32>
    %219 = arith.divf %217, %218 : vector<4x32xf32>
    %220 = vector.extract_strided_slice %207 {offsets = [0, 64], sizes = [4, 32], strides = [1, 1]} : vector<4x128xf32> to vector<4x32xf32>
    %221 = math.tanh %220 : vector<4x32xf32>
    %222 = vector.extract_strided_slice %207 {offsets = [0, 96], sizes = [4, 32], strides = [1, 1]} : vector<4x128xf32> to vector<4x32xf32>
    %223 = arith.negf %222 : vector<4x32xf32>
    %224 = math.exp %223 : vector<4x32xf32>
    %cst_40 = arith.constant 1.000000e+00 : f32
    %225 = vector.broadcast %cst_40 : f32 to vector<4x32xf32>
    %226 = arith.addf %225, %224 : vector<4x32xf32>
    %227 = arith.divf %225, %226 : vector<4x32xf32>
    %228 = arith.mulf %219, %202 : vector<4x32xf32>
    %229 = arith.mulf %213, %221 : vector<4x32xf32>
    %230 = arith.addf %228, %229 : vector<4x32xf32>
    %231 = math.tanh %230 : vector<4x32xf32>
    %232 = arith.mulf %227, %231 : vector<4x32xf32>
    %233 = vector.shape_cast %232 : vector<4x32xf32> to vector<1x4x32xf32>
    %c0_41 = arith.constant 0 : index
    %c0_42 = arith.constant 0 : index
    %c0_43 = arith.constant 0 : index
    %234 = vector.load %arg4[%c0_41, %c0_42, %c0_43] : memref<1x4x32xf32, #tpu.memory_space<vmem>>, vector<1x4x32xf32>
    tpu.vector_store %arg4[%c0_41, %c0_42, %c0_43], %233 {strides = array<i32>} : memref<1x4x32xf32, #tpu.memory_space<vmem>>, vector<1x4x32xf32>,
    %235 = vector.shape_cast %230 : vector<4x32xf32> to vector<1x4x32xf32>
    %c0_44 = arith.constant 0 : index
    %c0_45 = arith.constant 0 : index
    %c0_46 = arith.constant 0 : index
    %236 = vector.load %arg5[%c0_44, %c0_45, %c0_46] : memref<1x4x32xf32, #tpu.memory_space<vmem>>, vector<1x4x32xf32>
    tpu.vector_store %arg5[%c0_44, %c0_45, %c0_46], %235 {strides = array<i32>} : memref<1x4x32xf32, #tpu.memory_space<vmem>>, vector<1x4x32xf32>,
    return
  }
}

</mosaic_0001>

<bundles_post_ra>
// kernel: tpu_custom_call.1
= control target key start
LH: loop header
LB: loop body
LE: loop exit
PB: predicated region body
PF: predicated region fallthrough
CT: control target
= control target key end

     0   :  { %11 = vsyncpa [#allocation3], 0  ;;  %vm34_vm0 = vcmask 130048   ;;  %v1346_v3 = vmov 0.0|0.0   ;;  %vm1347_vm1 = vmmov 0   ;;  %v1348_v10 = vmov 0.0   ;;  %s1554_s0 = inlined_call_operand.vmem [shape: f32[32,16], index: 0, kind: input, shape index: {}]   ;;  %s1555_s1 = inlined_call_operand.vmem [shape: f32[16,128], index: 1, kind: input, shape index: {}]   ;;  %s1556_s2 = inlined_call_operand.vmem [shape: f32[32,128], index: 2, kind: input, shape index: {}]   ;;  %s1557_s3 = inlined_call_operand.vmem [shape: f32[1,128], index: 3, kind: input, shape index: {}]   ;;  %s1558_s4 = inlined_call_operand.hbm [shape: f32[1,4,32], index: 4, kind: output, shape index: {0}]   ;;  %s1559_s5 = inlined_call_operand.hbm [shape: f32[1,4,32], index: 5, kind: output, shape index: {1}]  }
   0x1   :  { %v25_v0 = vld [vmem:[%s1555_s1] sm:$0xff]  ;;  %v26_v1 = vld [vmem:[%s1555_s1 + $0x8] sm:$0xff]  ;;  %1178 = vmatprep.subr.bf16.mxu1 %v1346_v3  ;;  %v134_v8 = vld [vmem:[%s1556_s2 + $0x10] sm:$0xff]  ;;  %1094 = vmatprep.mubr.msk.f32.mxu1 %vm1347_vm1, %v1348_v10 }
   0x2   :  { %v132_v2 = vld [vmem:[%s1556_s2] sm:$0xff]  ;;  %v1174_v4 = vpack.c.bf16 %v26_v1, %v25_v0  ;;  %v133_v5 = vld [vmem:[%s1556_s2 + $0x8] sm:$0xff]  ;;  %v135_v9 = vld [vmem:[%s1556_s2 + $0x18] sm:$0xff] }
   0x3   :  { %v21_v6 = vld [vmem:[%s1554_s0] sm:$0xff]  ;;  %v1400_v7 = vpack.c.bf16 %v133_v5, %v132_v2 }
   0x4   :  { %1080 = vmatprep.mubr.msk.f32.mxu0 %vm34_vm0, %v21_v6 }
   0x5   :  { %12 = vsyncpa [#allocation5], 0  ;;  %1175 = vmatprep.subr.bf16.mxu0 %v1174_v4  ;;  %1180 = vmatpush3.bf16.msra.mxu1 %v1400_v7  ;;  %v22_v11 = vld [vmem:[%s1554_s0 + $0x8] sm:$0xff]  ;;  %v1415_v12 = vpack.c.bf16 %v135_v9, %v134_v8  ;;  %v1436_v13 = vld [vmem:[%s1557_s3] ss:$0 sm:$0xff]  ;;  %s1349_s9 = smov 64  }
   0x6   :  { %1177 = vmatpush3.bf16.msra.mxu0 %v1174_v4  ;;  %1181 = vmatprep.subr.bf16.mxu1 %v1346_v3  ;;  %s1350_s3 = smov 32   ;;  %v23_v30 = vld [vmem:[%s1554_s0 + $0x10] sm:$0xff]  ;;  %v24_v31 = vld [vmem:[%s1554_s0 + $0x18] sm:$0xff]  ;;  %vm136_vm2 = vcmask 261120   ;;  %s1351_s0 = smov 96   ;;  %vm975_vm3 = vcmask 261124  }
   0x7   :  { %1184 = vmatprep.subr.bf16.mxu0 %v1346_v3  ;;  %s1352_s14 = smov [#allocation4]  }
   0x8   :  { %s998_s15 = sshll.u32 %s1352_s14, 4  ;;  %s999_s15 = int_to_ptr.vmem [resolvable:$true] %s998_s15 }
   0x9   :  { %1081 = vmatmul.mubr.msk.f32.vlgmr.msra.gmra.mrb[0].mxu0 %vm34_vm0, %v22_v11  ;;  %1183 = vmatpush3.bf16.msra.mxu1 %v1415_v12  ;;  %s1298_s16 = scalar_lea.vmem %s999_s15, 64  ;;  %p1303_p1 = scmp.lt.s32.totalorder %s999_s15, %s999_s15 }
   0xa   :  { %1186 = vmatpush3.bf16.msra.mxu0 %v1400_v7  ;;  %1190 = vmatprep.subr.bf16.mxu1 %v1346_v3  ;;  %p1299_p0 = scmp.ne.s32.totalorder %s999_s15, %s1298_s16  ;;  %p1304_p2 = scmp.lt.s32.totalorder %s1298_s16, %s1298_s16 }
   0xb   :  { %1187 = vmatprep.subr.bf16.mxu0 %v1346_v3  ;;  %1083 = vmatprep.mubr.msk.f32.mxu0 %vm34_vm0, %v23_v30 }
   0xc   :  { %1095 = vmatmul.mubr.f32.vlgmr.msra.gmra.mrb[0].mxu1 %v1348_v10  ;;  %p1305_p3 = por %p1304_p2, %p1303_p1 }
   0xd   :  { %1192 = vmatpush3.bf16.msra.mxu1 %v1400_v7  ;;  %1116 = vmatprep.mubr.msk.f32.mxu1 %vm1347_vm1, %v1348_v10 }
   0xe   :  { %1189 = vmatpush3.bf16.msra.mxu0 %v1415_v12  ;;  %1193 = vmatprep.subr.bf16.mxu1 %v1346_v3  ;;  %p1306_p4 = pnand %p1305_p3, %p1299_p0 }
   0xf   :  { %1196 = vmatprep.subr.bf16.mxu0 %v1346_v3  ;;  %1084 = vmatmul.mubr.msk.f32.gmra.mrb[2].mxu0 %vm34_vm0, %v24_v31 }
  0x10   :  { %1105 = vmatprep.mubr.msk.f32.mxu0 %vm1347_vm1, %v1348_v10 }
  0x11   :  { %1195 = vmatpush3.bf16.msra.mxu1 %v1415_v12 }
  0x12   :  { %1202 = vmatprep.subr.bf16.mxu1 %v1346_v3 }
  0xdc   :  { %v1438_v14 = vpop.f32.mrb[0].mxu0 }
  0xdd   :  { %v113_v15 = vpop.f32.mrb[1].mxu0  ;;  %v119_v58 = vadd.f32 %v1438_v14, %v1436_v13 }
  0xde   :  { %v114_v16 = vadd.f32 %v1436_v13, %v113_v15 }
  0xdf   :  { %v206_v17 = vpop.f32.mrb[0].mxu1 }
  0xe0   :  { %v210_v18 = vadd.f32 %v206_v17, %v114_v16  ;;  %v1096_v19 = vpop.f32.mrb[1].mxu1 }
  0xe2   :  { %1234 = vtanh.f32 %v210_v18  ;;  %v1015_v21 = vmul.f32 -1.442695, %v210_v18  ;;  %v1455_v35 = vpop.f32.mrb[2].mxu0 }
  0xe3   :  { %v1457_v36 = vpop.f32.mrb[3].mxu0 }
  0xe4   :  { %1236 = vpow2.f32 %v1015_v21 }
  0xec   :  { %v1235_v20 = vpop.eup %1234 }
  0xed   :  { %220 = vrot.lane.b32.xlu0 %v1235_v20, %s1349_s9 }
  0xee   :  { %v1237_v22 = vpop.eup %1236 }
  0xef   :  { %v214_v23 = vadd.f32 1.0, %v1237_v22 }
  0xf1   :  { %1238 = vrcp.f32 %v214_v23 }
  0xfb   :  { %v1239_v24 = vpop.eup %1238 }
  0xfc   :  { %v218_v27 = vmul.f32 0.0, %v1239_v24 }
 0x15f   :  { %v221_v25 = vpop.permute.xlu0 %220 }
 0x160   :  { %v223_v26 = vmul.f32 %v1239_v24, %v221_v25 }
 0x162   :  { %225 = vrot.lane.b32.xlu0 %v223_v26, %s1350_s3 }
 0x1d4   :  { %v226_v28 = vpop.permute.xlu0 %225 }
 0x1d5   :  { %v228_v29 = vadd.f32 %v226_v28, %v218_v27 }
 0x1d7   :  { %1240 = vtanh.f32 %v228_v29  ;;  %v322_v49 = vrot.slane %v228_v29, 4 }
 0x1e1   :  { %v1241_v32 = vpop.eup %1240 }
 0x1e2   :  { %231 = vrot.lane.b32.xlu1 %v1241_v32, %s1349_s9 }
 0x254   :  { %v232_v33 = vpop.permute.xlu1 %231 }
 0x255   :  { %v234_v34 = vmul.f32 %v1239_v24, %v232_v33 }
 0x257   :  { %236 = vrot.lane.b32.xlu1 %v234_v34, %s1350_s3 }
 0x2c9   :  { %v237_v37 = vpop.permute.xlu1 %236 }
 0x2ca   :  { %1106 = vmatmul.mubr.msk.f32.vlgmr.msra.gmra.mrb[4].mxu0 %vm136_vm2, %v237_v37 }
 0x2cb   :  { %1198 = vmatpush3.bf16.msra.mxu0 %v1400_v7  ;;  %1127 = vmatprep.mubr.msk.f32.mxu0 %vm1347_vm1, %v1348_v10 }
 0x2cc   :  { %1199 = vmatprep.subr.bf16.mxu0 %v1346_v3 }
 0x2cf   :  { %1201 = vmatpush3.bf16.msra.mxu0 %v1415_v12 }
 0x2d0   :  { %1208 = vmatprep.subr.bf16.mxu0 %v1346_v3 }
 0x39d   :  { %v306_v38 = vpop.f32.mrb[4].mxu0 }
 0x39e   :  { %v311_v39 = vrot.slane %v306_v38, 4  ;;  %v1107_v40 = vpop.f32.mrb[5].mxu0 }
 0x39f   :  { %v124_v40 = vadd.f32 %v1436_v13, %v1457_v36 }
 0x3a0   :  { %v313_v41 = vadd.f32 %v311_v39, %v114_v16 }
 0x3a2   :  { %1242 = vtanh.f32 %v313_v41  ;;  %v1017_v43 = vmul.f32 -1.442695, %v313_v41 }
 0x3a4   :  { %1244 = vpow2.f32 %v1017_v43 }
 0x3ac   :  { %v1243_v42 = vpop.eup %1242 }
 0x3ad   :  { %326 = vrot.lane.b32.xlu0 %v1243_v42, %s1349_s9 }
 0x3ae   :  { %v1245_v44 = vpop.eup %1244 }
 0x3af   :  { %v317_v45 = vadd.f32 1.0, %v1245_v44 }
 0x3b1   :  { %1246 = vrcp.f32 %v317_v45 }
 0x3bb   :  { %v1247_v46 = vpop.eup %1246 }
 0x3bc   :  { %v324_v50 = vmul.f32 %v1247_v46, %v322_v49 }
 0x41f   :  { %v327_v47 = vpop.permute.xlu0 %326 }
 0x420   :  { %v329_v48 = vmul.f32 %v1247_v46, %v327_v47 }
 0x422   :  { %331 = vrot.lane.b32.xlu1 %v329_v48, %s1350_s3 }
 0x494   :  { %v332_v51 = vpop.permute.xlu1 %331 }
 0x495   :  { %v334_v52 = vadd.f32 %v332_v51, %v324_v50 }
 0x497   :  { %1248 = vtanh.f32 %v334_v52  ;;  %v426_v6 = vrot.slane %v334_v52, 4 }
 0x4a1   :  { %v1249_v53 = vpop.eup %1248 }
 0x4a2   :  { %337 = vrot.lane.b32.xlu0 %v1249_v53, %s1349_s9 }
 0x514   :  { %v338_v54 = vpop.permute.xlu0 %337 }
 0x515   :  { %v340_v55 = vmul.f32 %v1247_v46, %v338_v54 }
 0x517   :  { %v342_v56 = vrot.slane %v340_v55, 4 }
 0x519   :  { %343 = vrot.lane.b32.xlu1 %v342_v56, %s1350_s3 }
 0x58b   :  { %v344_v57 = vpop.permute.xlu1 %343 }
 0x58c   :  { %1117 = vmatmul.mubr.msk.f32.vlgmr.msra.gmra.mrb[2].mxu1 %vm136_vm2, %v344_v57 }
 0x58d   :  { %1204 = vmatpush3.bf16.msra.mxu1 %v1400_v7  ;;  %1138 = vmatprep.mubr.msk.f32.mxu1 %vm1347_vm1, %v1348_v10 }
 0x58e   :  { %1205 = vmatprep.subr.bf16.mxu1 %v1346_v3 }
 0x591   :  { %1207 = vmatpush3.bf16.msra.mxu1 %v1415_v12 }
 0x592   :  { %1214 = vmatprep.subr.bf16.mxu1 %v1346_v3 }
 0x65f   :  { %v413_v59 = vpop.f32.mrb[2].mxu1 }
 0x660   :  { %v417_v60 = vadd.f32 %v413_v59, %v119_v58  ;;  %v1118_v61 = vpop.f32.mrb[3].mxu1 }
 0x662   :  { %1250 = vtanh.f32 %v417_v60  ;;  %v1019_v63 = vmul.f32 -1.442695, %v417_v60 }
 0x664   :  { %1252 = vpow2.f32 %v1019_v63 }
 0x66c   :  { %v1251_v62 = vpop.eup %1250 }
 0x66d   :  { %430 = vrot.lane.b32.xlu0 %v1251_v62, %s1349_s9 }
 0x66e   :  { %v1253_v0 = vpop.eup %1252 }
 0x66f   :  { %v421_v1 = vadd.f32 1.0, %v1253_v0 }
 0x671   :  { %1254 = vrcp.f32 %v421_v1 }
 0x67b   :  { %v1255_v2 = vpop.eup %1254 }
 0x67c   :  { %v428_v8 = vmul.f32 %v1255_v2, %v426_v6 }
 0x6df   :  { %v431_v4 = vpop.permute.xlu0 %430 }
 0x6e0   :  { %v433_v5 = vmul.f32 %v1255_v2, %v431_v4 }
 0x6e2   :  { %435 = vrot.lane.b32.xlu1 %v433_v5, %s1350_s3 }
 0x754   :  { %v436_v9 = vpop.permute.xlu1 %435 }
 0x755   :  { %v438_v11 = vadd.f32 %v436_v9, %v428_v8 }
 0x757   :  { %1256 = vtanh.f32 %v438_v11  ;;  %v532_v29 = vrot.slane %v438_v11, 4 }
 0x761   :  { %v1257_v14 = vpop.eup %1256 }
 0x762   :  { %441 = vrot.lane.b32.xlu0 %v1257_v14, %s1349_s9 }
 0x7d4   :  { %v442_v15 = vpop.permute.xlu0 %441 }
 0x7d5   :  { %v444_v16 = vmul.f32 %v1255_v2, %v442_v15  ;;  %v129_v15 = vadd.f32 %v1455_v35, %v1436_v13 }
 0x7d7   :  { %446 = vrot.lane.b32.xlu1 %v444_v16, %s1350_s3 }
 0x849   :  { %v447_v17 = vpop.permute.xlu1 %446 }
 0x84a   :  { %1128 = vmatmul.mubr.msk.f32.vlgmr.msra.gmra.mrb[6].mxu0 %vm136_vm2, %v447_v17 }
 0x84b   :  { %1210 = vmatpush3.bf16.msra.mxu0 %v1400_v7  ;;  %1149 = vmatprep.mubr.msk.f32.mxu0 %vm1347_vm1, %v1348_v10 }
 0x84c   :  { %1211 = vmatprep.subr.bf16.mxu0 %v1346_v3 }
 0x84f   :  { %1213 = vmatpush3.bf16.msra.mxu0 %v1415_v12 }
 0x850   :  { %1220 = vmatprep.subr.bf16.mxu0 %v1346_v3 }
 0x91d   :  { %v516_v18 = vpop.f32.mrb[6].mxu0 }
 0x91e   :  { %v521_v19 = vrot.slane %v516_v18, 4  ;;  %v1129_v20 = vpop.f32.mrb[7].mxu0 }
 0x920   :  { %v523_v21 = vadd.f32 %v521_v19, %v119_v58 }
 0x922   :  { %1258 = vtanh.f32 %v523_v21  ;;  %v1021_v23 = vmul.f32 -1.442695, %v523_v21 }
 0x924   :  { %1260 = vpow2.f32 %v1021_v23 }
 0x92c   :  { %v1259_v22 = vpop.eup %1258 }
 0x92d   :  { %536 = vrot.lane.b32.xlu0 %v1259_v22, %s1349_s9 }
 0x92e   :  { %v1261_v24 = vpop.eup %1260 }
 0x92f   :  { %v527_v25 = vadd.f32 1.0, %v1261_v24 }
 0x931   :  { %1262 = vrcp.f32 %v527_v25 }
 0x93b   :  { %v1263_v26 = vpop.eup %1262 }
 0x93c   :  { %v534_v30 = vmul.f32 %v1263_v26, %v532_v29 }
 0x99f   :  { %v537_v27 = vpop.permute.xlu0 %536 }
 0x9a0   :  { %v539_v28 = vmul.f32 %v1263_v26, %v537_v27 }
 0x9a2   :  { %541 = vrot.lane.b32.xlu1 %v539_v28, %s1350_s3 }
 0xa14   :  { %v542_v31 = vpop.permute.xlu1 %541 }
 0xa15   :  { %v544_v32 = vadd.f32 %v542_v31, %v534_v30 }
 0xa17   :  { %1264 = vtanh.f32 %v544_v32  ;;  %v636_v51 = vrot.slane %v544_v32, 4 }
 0xa21   :  { %v1265_v33 = vpop.eup %1264 }
 0xa22   :  { %547 = vrot.lane.b32.xlu0 %v1265_v33, %s1349_s9 }
 0xa94   :  { %v548_v34 = vpop.permute.xlu0 %547 }
 0xa95   :  { %v550_v37 = vmul.f32 %v1263_v26, %v548_v34 }
 0xa97   :  { %v552_v38 = vrot.slane %v550_v37, 4 }
 0xa99   :  { %553 = vrot.lane.b32.xlu1 %v552_v38, %s1350_s3 }
 0xb0b   :  { %v554_v39 = vpop.permute.xlu1 %553 }
 0xb0c   :  { %1139 = vmatmul.mubr.msk.f32.vlgmr.msra.gmra.mrb[4].mxu1 %vm136_vm2, %v554_v39 }
 0xb0d   :  { %1216 = vmatpush3.bf16.msra.mxu1 %v1400_v7  ;;  %1160 = vmatprep.mubr.msk.f32.mxu1 %vm1347_vm1, %v1348_v10 }
 0xb0e   :  { %1217 = vmatprep.subr.bf16.mxu1 %v1346_v3 }
 0xb11   :  { %1219 = vmatpush3.bf16.msra.mxu1 %v1415_v12 }
 0xbdf   :  { %v623_v41 = vpop.f32.mrb[4].mxu1 }
 0xbe0   :  { %v627_v42 = vadd.f32 %v623_v41, %v124_v40  ;;  %v1140_v43 = vpop.f32.mrb[5].mxu1 }
 0xbe2   :  { %1266 = vtanh.f32 %v627_v42  ;;  %v1023_v45 = vmul.f32 -1.442695, %v627_v42 }
 0xbe4   :  { %1268 = vpow2.f32 %v1023_v45 }
 0xbec   :  { %v1267_v44 = vpop.eup %1266 }
 0xbed   :  { %640 = vrot.lane.b32.xlu0 %v1267_v44, %s1349_s9 }
 0xbee   :  { %v1269_v46 = vpop.eup %1268 }
 0xbef   :  { %v631_v47 = vadd.f32 1.0, %v1269_v46 }
 0xbf1   :  { %1270 = vrcp.f32 %v631_v47 }
 0xbfb   :  { %v1271_v48 = vpop.eup %1270 }
 0xbfc   :  { %v638_v52 = vmul.f32 %v1271_v48, %v636_v51 }
 0xc5f   :  { %v641_v49 = vpop.permute.xlu0 %640 }
 0xc60   :  { %v643_v50 = vmul.f32 %v1271_v48, %v641_v49 }
 0xc62   :  { %645 = vrot.lane.b32.xlu1 %v643_v50, %s1350_s3 }
 0xcd4   :  { %v646_v36 = vpop.permute.xlu1 %645 }
 0xcd5   :  { %v648_v53 = vadd.f32 %v646_v36, %v638_v52 }
 0xcd7   :  { %1272 = vtanh.f32 %v648_v53 }
 0xce1   :  { %v1273_v54 = vpop.eup %1272 }
 0xce2   :  { %651 = vrot.lane.b32.xlu0 %v1273_v54, %s1349_s9 }
 0xd54   :  { %v652_v55 = vpop.permute.xlu0 %651 }
 0xd55   :  { %v654_v56 = vmul.f32 %v1271_v48, %v652_v55 }
 0xd57   :  { %656 = vrot.lane.b32.xlu1 %v654_v56, %s1350_s3 }
 0xdc9   :  { %v657_v57 = vpop.permute.xlu1 %656 }
 0xdca   :  { %1150 = vmatmul.mubr.msk.f32.vlgmr.msra.gmra.mrb[8].mxu0 %vm136_vm2, %v657_v57 }
 0xdcb   :  { %1222 = vmatpush3.bf16.msra.mxu0 %v1400_v7  ;;  %1171 = vmatprep.mubr.msk.f32.mxu0 %vm1347_vm1, %v1348_v10 }
 0xdcc   :  { %1223 = vmatprep.subr.bf16.mxu0 %v1346_v3  ;;  %v742_v3 = vrot.slane %v648_v53, 4 }
 0xdcf   :  { %1225 = vmatpush3.bf16.msra.mxu0 %v1415_v12 }
 0xe9d   :  { %v726_v58 = vpop.f32.mrb[8].mxu0 }
 0xe9e   :  { %v731_v59 = vrot.slane %v726_v58, 4  ;;  %v1151_v60 = vpop.f32.mrb[9].mxu0 }
 0xea0   :  { %v733_v61 = vadd.f32 %v731_v59, %v124_v40 }
 0xea2   :  { %1274 = vtanh.f32 %v733_v61  ;;  %v1025_v63 = vmul.f32 -1.442695, %v733_v61 }
 0xea4   :  { %1276 = vpow2.f32 %v1025_v63 }
 0xeac   :  { %v1275_v62 = vpop.eup %1274 }
 0xead   :  { %746 = vrot.lane.b32.xlu0 %v1275_v62, %s1349_s9 }
 0xeae   :  { %v1277_v0 = vpop.eup %1276 }
 0xeaf   :  { %v737_v1 = vadd.f32 1.0, %v1277_v0 }
 0xeb1   :  { %1278 = vrcp.f32 %v737_v1 }
 0xebb   :  { %v1279_v7 = vpop.eup %1278 }
 0xebc   :  { %v744_v12 = vmul.f32 %v1279_v7, %v742_v3 }
 0xf1f   :  { %v747_v2 = vpop.permute.xlu0 %746 }
 0xf20   :  { %v749_v10 = vmul.f32 %v1279_v7, %v747_v2 }
 0xf22   :  { %751 = vrot.lane.b32.xlu1 %v749_v10, %s1350_s3 }
 0xf94   :  { %v752_v4 = vpop.permute.xlu1 %751 }
 0xf95   :  { %v754_v5 = vadd.f32 %v752_v4, %v744_v12 }
 0xf97   :  { %1280 = vtanh.f32 %v754_v5  ;;  %v846_v26 = vrot.slane %v754_v5, 4 }
 0xfa1   :  { %v1281_v6 = vpop.eup %1280 }
 0xfa2   :  { %757 = vrot.lane.b32.xlu0 %v1281_v6, %s1349_s9 }
0x1014   :  { %v758_v8 = vpop.permute.xlu0 %757 }
0x1015   :  { %v760_v9 = vmul.f32 %v1279_v7, %v758_v8 }
0x1017   :  { %v762_v11 = vrot.slane %v760_v9, 4 }
0x1019   :  { %763 = vrot.lane.b32.xlu1 %v762_v11, %s1350_s3 }
0x108b   :  { %v764_v14 = vpop.permute.xlu1 %763 }
0x108c   :  { %1161 = vmatmul.mubr.msk.f32.vlgmr.msra.gmra.mrb[6].mxu1 %vm136_vm2, %v764_v14 }
0x115f   :  { %v833_v16 = vpop.f32.mrb[6].mxu1 }
0x1160   :  { %v837_v17 = vadd.f32 %v833_v16, %v129_v15  ;;  %v1162_v18 = vpop.f32.mrb[7].mxu1 }
0x1162   :  { %1282 = vtanh.f32 %v837_v17  ;;  %v1027_v20 = vmul.f32 -1.442695, %v837_v17 }
0x1164   :  { %1284 = vpow2.f32 %v1027_v20 }
0x116c   :  { %v1283_v19 = vpop.eup %1282 }
0x116d   :  { %850 = vrot.lane.b32.xlu0 %v1283_v19, %s1349_s9 }
0x116e   :  { %v1285_v21 = vpop.eup %1284 }
0x116f   :  { %v841_v22 = vadd.f32 1.0, %v1285_v21 }
0x1171   :  { %1286 = vrcp.f32 %v841_v22 }
0x117b   :  { %v1287_v23 = vpop.eup %1286 }
0x117c   :  { %v848_v27 = vmul.f32 %v1287_v23, %v846_v26 }
0x11df   :  { %v851_v24 = vpop.permute.xlu0 %850 }
0x11e0   :  { %v853_v25 = vmul.f32 %v1287_v23, %v851_v24 }
0x11e2   :  { %855 = vrot.lane.b32.xlu1 %v853_v25, %s1350_s3 }
0x1254   :  { %v856_v13 = vpop.permute.xlu1 %855 }
0x1255   :  { %v858_v35 = vadd.f32 %v856_v13, %v848_v27 }
0x1257   :  { %1288 = vtanh.f32 %v858_v35  ;;  %v952_v45 = vrot.slane %v858_v35, 4 }
0x1261   :  { %v1289_v28 = vpop.eup %1288 }
0x1262   :  { %861 = vrot.lane.b32.xlu0 %v1289_v28, %s1349_s9 }
0x12d4   :  { %v862_v29 = vpop.permute.xlu0 %861 }
0x12d5   :  { %v864_v30 = vmul.f32 %v1287_v23, %v862_v29 }
0x12d7   :  { %866 = vrot.lane.b32.xlu1 %v864_v30, %s1350_s3 }
0x1349   :  { %v867_v31 = vpop.permute.xlu1 %866 }
0x134a   :  { %1172 = vmatmul.mubr.msk.f32.vlgmr.msra.gmra.mrb[10].mxu0 %vm136_vm2, %v867_v31 }
0x141d   :  { %v936_v32 = vpop.f32.mrb[10].mxu0 }
0x141e   :  { %v941_v33 = vrot.slane %v936_v32, 4  ;;  %v1173_v34 = vpop.f32.mrb[11].mxu0 }
0x1420   :  { %v943_v37 = vadd.f32 %v941_v33, %v129_v15 }
0x1422   :  { %1290 = vtanh.f32 %v943_v37  ;;  %v1029_v39 = vmul.f32 -1.442695, %v943_v37 }
0x1424   :  { %1292 = vpow2.f32 %v1029_v39 }
0x142c   :  { %v1291_v38 = vpop.eup %1290 }
0x142d   :  { %956 = vrot.lane.b32.xlu0 %v1291_v38, %s1349_s9 }
0x142e   :  { %v1293_v40 = vpop.eup %1292 }
0x142f   :  { %v947_v41 = vadd.f32 1.0, %v1293_v40 }
0x1431   :  { %1294 = vrcp.f32 %v947_v41 }
0x143b   :  { %v1295_v42 = vpop.eup %1294 }
0x143c   :  { %v954_v46 = vmul.f32 %v1295_v42, %v952_v45 }
0x149f   :  { %v957_v43 = vpop.permute.xlu0 %956 }
0x14a0   :  { %v959_v44 = vmul.f32 %v1295_v42, %v957_v43 }
0x14a2   :  { %961 = vrot.lane.b32.xlu1 %v959_v44, %s1350_s3 }
0x1514   :  { %v962_v47 = vpop.permute.xlu1 %961 }
0x1515   :  { %v964_v48 = vadd.f32 %v962_v47, %v954_v46 }
0x1517   :  { %1296 = vtanh.f32 %v964_v48 }
0x1521   :  { %v1297_v49 = vpop.eup %1296 }
0x1522   :  { %967 = vrot.lane.b32.xlu0 %v1297_v49, %s1349_s9 }
0x1526   :  { %978 = vrot.lane.b32.xlu0 %v964_v48, %s1351_s0 }
0x1594   :  { %v968_v50 = vpop.permute.xlu0 %967 }
0x1595   :  { %v970_v51 = vmul.f32 %v1295_v42, %v968_v50 }
0x1597   :  { %972 = vrot.lane.b32.xlu1 %v970_v51, %s1350_s3 }
0x1598   :  { %v979_v52 = vpop.permute.xlu0 %978 }
0x1599   :  { %981 = vst.msk [vmem:[#allocation4 - $0x4] sm:$0xf0] %vm975_vm3, %v979_v52 }
0x159a   :  { %1309 = shalt.err (!%p1306_p4)
}
0x159b   :  { %s1310_s19 = scalar_lea.hbm %s1559_s5, 64 }
0x159c   :  { %p1311_p5 = scmp.ne.s32.totalorder %s1559_s5, %s1310_s19  ;;  %p1314_p6 = scmp.lt.u32.totalorder %s1310_s19, %s1559_s5 }
0x159e   :  { %p1316_p7 = pnand %p1314_p6, %p1311_p5 }
0x15a0   :  { %1319 = shalt.err (!%p1316_p7)
}
0x15a1   :  { %1001 = dma.vmem_to_hbm [thread:$0]  %s999_s15, 64, %s1559_s5, [#allocation5]  }
0x15a2   :  { %s1353_s26 = smov [#allocation2]  }
0x15a3   :  { %s988_s27 = sshll.u32 %s1353_s26, 4  ;;  %s989_s27 = int_to_ptr.vmem [resolvable:$true] %s988_s27 }
0x15a4   :  { %s1320_s1 = scalar_lea.vmem %s989_s27, 64  ;;  %p1325_p9 = scmp.lt.s32.totalorder %s989_s27, %s989_s27 }
0x15a5   :  { %p1321_p8 = scmp.ne.s32.totalorder %s989_s27, %s1320_s1  ;;  %p1326_p10 = scmp.lt.s32.totalorder %s1320_s1, %s1320_s1 }
0x15a7   :  { %p1327_p11 = por %p1326_p10, %p1325_p9 }
0x15a9   :  { %p1328_p12 = pnand %p1327_p11, %p1321_p8 }
0x1609   :  { %v973_v36 = vpop.permute.xlu1 %972 }
0x160a   :  { %976 = vst.msk [vmem:[#allocation2 - $0x4] sm:$0xf0] %vm975_vm3, %v973_v36 }
0x160b   :  { %1331 = shalt.err (!%p1328_p12)
}
0x160c   :  { %s1332_s30 = scalar_lea.hbm %s1558_s4, 64 }
0x160d   :  { %p1333_p13 = scmp.ne.s32.totalorder %s1558_s4, %s1332_s30  ;;  %p1336_p0 = scmp.lt.u32.totalorder %s1332_s30, %s1558_s4 }
0x160f   :  { %p1338_p1 = pnand %p1336_p0, %p1333_p13 }
0x1611   :  { %1341 = shalt.err (!%p1338_p1)
}
0x1612   :  { %991 = dma.vmem_to_hbm [thread:$0]  %s989_s27, 64, %s1558_s4, [#allocation3]  }
0x1613   :  { %1342 = dma.done.wait [#allocation3], 64  }
0x1614   :  { %1343 = vsyncadd [#allocation3], 4294967232 }
0x1615   :  { %1344 = dma.done.wait [#allocation5], 64  }
0x1616   :  { %1345 = vsyncadd [#allocation5], 4294967232 }
0x1617   :  { %1008 = vsyncpa [#allocation3], 1 }
0x1618   :  { %1009 = vsyncpa [#allocation5], 1 }

</bundles_post_ra>
